<compile_context>
chip_gen: v7x
topology: tpu7x:2x2x1
jax: 0.10.0
libtpu: 0.0.40
codegen_flags: <defaults>
</compile_context>

<pallas_src>
import functools

import jax
import jax.numpy as jnp
from jax.experimental import pallas as pl
from jax.experimental.pallas import tpu as pltpu


def _round_up(x, m):
    return (x + m - 1) // m * m


def _round_down(x, m):
    return (x // m) * m


def _cdiv(a, b):
    return (a + b - 1) // b


def _uniform_noise_kernel(seed_ref, params_ref, local_ref, x_ref, o_ref, *,
                          blk_r, blk_t, row_stride):
    # Scalar work (free scalar-ALU slots): this block's global counter offset
    # and the seed-derived hash key.
    i = pl.program_id(0).astype(jnp.uint32)
    j = pl.program_id(1).astype(jnp.uint32)
    base = i * jnp.uint32((blk_r * row_stride) & 0xFFFFFFFF) + j * jnp.uint32(blk_t)
    key = seed_ref[0].astype(jnp.uint32) * jnp.uint32(0x9E3779B9) + jnp.uint32(0x85EBCA6B)

    # Per-element counter: resident local index plane (local[r, c] = r*T + c,
    # DMA'd once since its index_map is constant) + scalar base.  This is the
    # flat element index with the *un-padded* T, so the noise field does not
    # depend on the tiling.
    ctr = local_ref[...] + base

    # Trimmed integer hash (one uint32 multiply, two xor-shifts): adequate
    # quality for augmentation white noise at roughly half the VALU cost of
    # full lowbias32 -- that is the binding slot on v7x (and bf16 on v6e).
    x = ctr ^ key
    x = x ^ (x >> jnp.uint32(16))
    x = x * jnp.uint32(0x7FEB352D)
    x = x ^ (x >> jnp.uint32(16))

    # Top 24 bits -> exact f32, then one folded multiply-add:
    #   noise = u24 * (2*snr / 2^24) + (-snr)   in   [-snr, snr)
    u24 = (x >> jnp.uint32(8)).astype(jnp.int32).astype(jnp.float32)
    noise = u24 * params_ref[0] + params_ref[1]

    # Reference semantics: audio + noise.astype(audio.dtype).  Adding in the
    # audio dtype uses the bf16 VALU on v6e/v7x; v5e's compiler upcasts.
    # TODO(synk): for bf16 inputs on v7x, derive two 16-bit uniforms per hash
    # word (hi/lo split + interleave) to halve the hash work per element.
    o_ref[...] = x_ref[...] + noise.astype(o_ref.dtype)


def uniform_white_noise(audio, noise_snr, seed, *, donate_audio=False):
    """Add uniform white noise in [-noise_snr, noise_snr) to `audio` (..., T)."""
    orig_shape = audio.shape
    T = orig_shape[-1]
    R = 1
    for d in orig_shape[:-1]:
        R *= d
    x2d = audio.reshape(R, T)

    # ---- block-size selection -------------------------------------------
    # ~1.5M elements per block (6 MiB at f32): per-grid-step overhead (<~0.35us)
    # is a few % even at v7x's 3.2 TB/s, and double-buffered in + out + the
    # int32 index plane stay under the 48 MiB VMEM limit on every generation.
    target_elems = (6 * 1024 * 1024) // 4

    if T <= 128:
        blk_t = T                                   # full lane dim (legal)
    else:
        blk_t = min(4096, _round_down(T, 128))      # lane-dense multiple of 128

    if R < 8:
        blk_r = R                                   # full sublane dim; no row padding
    else:
        budget_rows = max(8, _round_down(target_elems // blk_t, 8))
        blk_r = min(budget_rows, _round_down(R, 8))

    # Give v7x's two TensorCores something to split when everything fits one
    # block (harmless on single-TC v5e/v6e).
    if _cdiv(R, blk_r) * _cdiv(T, blk_t) == 1:
        if blk_t >= 256:
            blk_t = _round_up(blk_t // 2, 128)
        elif blk_r >= 16:
            blk_r = _round_up(blk_r // 2, 8)

    grid = (_cdiv(R, blk_r), _cdiv(T, blk_t))

    # ---- small host-side operands ----------------------------------------
    snr = jnp.asarray(noise_snr, dtype=jnp.float32)          # traced-snr safe
    params = jnp.stack([snr * jnp.float32(2.0 / (1 << 24)), -snr])
    seed_arr = jnp.asarray(seed, dtype=jnp.int32).reshape(1)
    # Resident local index plane: local[r, c] = r * T + c (uint32, mod 2^32).
    local = (jnp.arange(blk_r, dtype=jnp.uint32)[:, None] * jnp.uint32(T % (1 << 32))
             + jnp.arange(blk_t, dtype=jnp.uint32)[None, :])

    kernel = functools.partial(_uniform_noise_kernel,
                               blk_r=blk_r, blk_t=blk_t, row_stride=T)

    out2d = pl.pallas_call(
        kernel,
        out_shape=jax.ShapeDtypeStruct((R, T), audio.dtype),
        grid_spec=pltpu.PrefetchScalarGridSpec(
            num_scalar_prefetch=0,
            grid=grid,
            in_specs=[
                pl.BlockSpec(memory_space=pltpu.MemorySpace.SMEM),   # seed (1,) i32
                pl.BlockSpec(memory_space=pltpu.MemorySpace.SMEM),   # (scale, offset) f32
                pl.BlockSpec((blk_r, blk_t), lambda i, j: (0, 0)),   # index plane (resident)
                pl.BlockSpec((blk_r, blk_t), lambda i, j: (i, j)),   # audio tile
            ],
            out_specs=pl.BlockSpec((blk_r, blk_t), lambda i, j: (i, j)),
        ),
        compiler_params=pltpu.CompilerParams(
            dimension_semantics=("parallel", "parallel"),
            vmem_limit_bytes=48 * 1024 * 1024,
        ),
        input_output_aliases=({3: 0} if donate_audio else {}),
    )(seed_arr, params, local, x2d)

    return out2d.reshape(orig_shape)


if __name__ == "__main__":
    key = jax.random.PRNGKey(0)
    k_audio, k_snr = jax.random.split(key)

    # Small audio batch: (batch=2, channels=4, samples=2048)
    B, C, T = 2, 4, 2048
    audio = jax.random.normal(k_audio, (B, C, T), dtype=jnp.float32)

    # noise_snr = random() * max_snr  (drawn deterministically here, once per forward)
    max_snr = 0.01
    noise_snr = float(jax.random.uniform(k_snr, (), minval=0.0, maxval=max_snr))

    out = uniform_white_noise(audio, noise_snr, seed=1234)
    out = jax.block_until_ready(out)

    # Sanity: the perturbation must be bounded by noise_snr and nonzero.
    delta = jnp.abs(out - audio)
    assert out.shape == audio.shape and out.dtype == audio.dtype
    assert float(jnp.max(delta)) <= noise_snr + 1e-6
    assert float(jnp.max(delta)) > 0.0

    print("KERNEL_OK")
</pallas_src>

<mosaic_0001>
module attributes {stable_mosaic.version = 11 : i64} {
  func.func @_uniform_noise_kernel(%arg0: i32, %arg1: i32, %arg2: memref<1xi32, #tpu.memory_space<smem>>, %arg3: memref<2xf32, #tpu.memory_space<smem>>, %arg4: memref<8x1024xi32, #tpu.memory_space<vmem>>, %arg5: memref<8x1024xf32, #tpu.memory_space<vmem>>, %arg6: memref<8x1024xf32, #tpu.memory_space<vmem>>) attributes {dimension_semantics = [#tpu.dimension_semantics<parallel>, #tpu.dimension_semantics<parallel>], iteration_bounds = array<i64: 1, 2>, scalar_prefetch = 0 : i64, scratch_operands = 0 : i64, tpu.core_type = #tpu.core_type<tc>, window_params = [{transform_indices = @transform_0, window_bounds = array<i64: 1>}, {transform_indices = @transform_1, window_bounds = array<i64: 2>}, {pipeline_mode = #tpu.pipeline_mode<synchronous>, transform_indices = @transform_2, window_bounds = array<i64: 8, 1024>}, {transform_indices = @transform_3, window_bounds = array<i64: 8, 1024>}, {transform_indices = @transform_4, window_bounds = array<i64: 8, 1024>}]} {
    %c16384_i32 = arith.constant 16384 : i32
    %0 = arith.muli %arg0, %c16384_i32 : i32
    %c1024_i32 = arith.constant 1024 : i32
    %1 = arith.muli %arg1, %c1024_i32 : i32
    %2 = arith.addi %0, %1 : i32
    %c0 = arith.constant 0 : index
    %3 = memref.load %arg2[%c0] : memref<1xi32, #tpu.memory_space<smem>>
    %c-1640531527_i32 = arith.constant -1640531527 : i32
    %4 = arith.muli %3, %c-1640531527_i32 : i32
    %c-2048144789_i32 = arith.constant -2048144789 : i32
    %5 = arith.addi %4, %c-2048144789_i32 : i32
    %c0_0 = arith.constant 0 : index
    %c0_1 = arith.constant 0 : index
    %6 = vector.load %arg4[%c0_0, %c0_1] : memref<8x1024xi32, #tpu.memory_space<vmem>>, vector<8x1024xi32>
    %7 = vector.broadcast %2 : i32 to vector<8x1024xi32>
    %8 = arith.addi %6, %7 : vector<8x1024xi32>
    %9 = vector.broadcast %5 : i32 to vector<8x1024xi32>
    %10 = arith.xori %8, %9 : vector<8x1024xi32>
    %c16_i32 = arith.constant 16 : i32
    %11 = vector.broadcast %c16_i32 : i32 to vector<8x1024xi32>
    %12 = arith.shrui %10, %11 : vector<8x1024xi32>
    %13 = arith.xori %10, %12 : vector<8x1024xi32>
    %c2146121005_i32 = arith.constant 2146121005 : i32
    %14 = vector.broadcast %c2146121005_i32 : i32 to vector<8x1024xi32>
    %15 = arith.muli %13, %14 : vector<8x1024xi32>
    %c16_i32_2 = arith.constant 16 : i32
    %16 = vector.broadcast %c16_i32_2 : i32 to vector<8x1024xi32>
    %17 = arith.shrui %15, %16 : vector<8x1024xi32>
    %18 = arith.xori %15, %17 : vector<8x1024xi32>
    %c8_i32 = arith.constant 8 : i32
    %19 = vector.broadcast %c8_i32 : i32 to vector<8x1024xi32>
    %20 = arith.shrui %18, %19 : vector<8x1024xi32>
    %21 = arith.sitofp %20 : vector<8x1024xi32> to vector<8x1024xf32>
    %c0_3 = arith.constant 0 : index
    %22 = memref.load %arg3[%c0_3] : memref<2xf32, #tpu.memory_space<smem>>
    %23 = vector.broadcast %22 : f32 to vector<8x1024xf32>
    %24 = arith.mulf %21, %23 : vector<8x1024xf32>
    %c1 = arith.constant 1 : index
    %25 = memref.load %arg3[%c1] : memref<2xf32, #tpu.memory_space<smem>>
    %26 = vector.broadcast %25 : f32 to vector<8x1024xf32>
    %27 = arith.addf %24, %26 : vector<8x1024xf32>
    %c0_4 = arith.constant 0 : index
    %c0_5 = arith.constant 0 : index
    %28 = vector.load %arg5[%c0_4, %c0_5] : memref<8x1024xf32, #tpu.memory_space<vmem>>, vector<8x1024xf32>
    %29 = arith.addf %28, %27 : vector<8x1024xf32>
    %c0_6 = arith.constant 0 : index
    %c0_7 = arith.constant 0 : index
    %30 = vector.load %arg6[%c0_6, %c0_7] : memref<8x1024xf32, #tpu.memory_space<vmem>>, vector<8x1024xf32>
    tpu.vector_store %arg6[%c0_6, %c0_7], %29 {strides = array<i32>} : memref<8x1024xf32, #tpu.memory_space<vmem>>, vector<8x1024xf32>,
    return
  }
  func.func @transform_0(%arg0: i32, %arg1: i32) -> i32 {
    %c0_i32 = arith.constant 0 : i32
    %c0_i32_0 = arith.constant 0 : i32
    return %c0_i32 : i32
  }
  func.func @transform_1(%arg0: i32, %arg1: i32) -> i32 {
    %c0_i32 = arith.constant 0 : i32
    %c0_i32_0 = arith.constant 0 : i32
    return %c0_i32 : i32
  }
  func.func @transform_2(%arg0: i32, %arg1: i32) -> (i32, i32) {
    %c0_i32 = arith.constant 0 : i32
    %c0_i32_0 = arith.constant 0 : i32
    %c0_i32_1 = arith.constant 0 : i32
    return %c0_i32, %c0_i32_0 : i32, i32
  }
  func.func @transform_3(%arg0: i32, %arg1: i32) -> (i32, i32) {
    %c0_i32 = arith.constant 0 : i32
    return %arg0, %arg1 : i32, i32
  }
  func.func @transform_4(%arg0: i32, %arg1: i32) -> (i32, i32) {
    %c0_i32 = arith.constant 0 : i32
    return %arg0, %arg1 : i32, i32
  }
}

</mosaic_0001>

<bundles_post_ra>
// kernel: tpu_custom_call.1
= control target key start
LH: loop header
LB: loop body
LE: loop exit
PB: predicated region body
PF: predicated region fallthrough
CT: control target
= control target key end

     0   :  { %s1085_s0 = inlined_call_operand.<no memory space> [shape: s32[1], index: 0, kind: input, shape index: {}]   ;;  %s1086_s1 = inlined_call_operand.vmem [shape: f32[2], index: 1, kind: input, shape index: {}]   ;;  %s1087_s2 = inlined_call_operand.hbm [shape: u32[8,1024], index: 2, kind: input, shape index: {}]   ;;  %s1088_s3 = inlined_call_operand.hbm [shape: f32[8,2048], index: 3, kind: input, shape index: {}]   ;;  %s1089_s4 = inlined_call_operand.hbm [shape: f32[8,2048], index: 4, kind: output, shape index: {}]  }
   0x1   :  { %9 = sst [smem:[#allocation2]] %s1085_s0 }
   0x2   :  { %10 = vsyncpa [#allocation6], 0 }
   0x3   :  { %11 = vsyncpa [#allocation4], 0 }
   0x4   :  { %12 = vsyncpa [#allocation9], 0 }
   0x5   :  { %14 = vsyncpa [#allocation9 + $0x1], 0 }
   0x6   :  { %15 = vsyncpa [#allocation5], 0 }
   0x7   :  { %17 = vsyncpa [#allocation5 + $0x1], 0  ;;  %s822_s17 = smov 0   ;;  %s824_s18 = smov 0  }
   0x8   :  { %s826_s19 = smov 0   ;;  %s828_s20 = smov 0  }
   0x9   :  { %s830_s21 = smov 0   ;;  %s832_s22 = smov 0  }
   0xa LB: > { %s519_s0 = sadd.s32 4294967295, %s788_s22   ;;  %s520_s23 = sadd.s32 4294967294, %s788_s22   ;;  %s788_s22 = sphi %s832_s22, %s23_s22   ;;  %s784_s21 = sphi %s830_s21, %s1111_s21   ;;  %s780_s20 = sphi %s828_s20, %s1110_s20   ;;  %s776_s19 = sphi %s826_s19, %s1109_s19   ;;  %s772_s18 = sphi %s824_s18, %s1108_s18   ;;  %s768_s17 = sphi %s822_s17, %s1107_s17  }
   0xb   : > { %p120_p0 = scmp.ne.s32.totalorder %s772_s18, %s768_s17  ;;  %p856_p1 = scmp.eq.s32.totalorder %s519_s0, 0 }
   0xc   : > { %p860_p2 = scmp.eq.s32.totalorder %s519_s0, 1  ;;  %p152_p3 = scmp.eq.s32.totalorder %s520_s23, 1 }
   0xd   : > { %s1094_s24 = scalar_select %p856_p1, 1, 0 }
   0xe   : > { %p866_p4 = por %p856_p1, %p120_p0  ;;  %p521_p5 = scmp.ge.s32.totalorder %s788_s22, 1 }
   0xf   : > { %p871_p6 = por %p152_p3, %p120_p0  ;;  %p159_p7 = scmp.lt.s32.totalorder %s788_s22, 3 }
  0x10   : > { %s1096_s26 = scalar_select %p866_p4, 1, 0 }
  0x11   : > { %s1097_s27 = scalar_select %p871_p6, 1, 0 }
  0x12   : > { %s175_s30 = sshll.u32 %s1086_s1, 4  ;;  %p879_p8 = pnand %p521_p5, %p159_p7  ;;  %s176_s30 = int_to_ptr.vmem [resolvable:$true] %s175_s30 }
  0x13   : > { %s790_s6 = smov [#allocation7]   ;;  %s625_s9 = scalar_lea.vmem %s176_s30, 16 }
  0x14   : > { %p554_p10 = pneg %p879_p8  ;;  %s186_s7 = sshll.u32 %s790_s6, 4  ;;  %s892_s7 = int_to_ptr.vmem [resolvable:$true] %s186_s7 }
  0x15   : > { %p626_p12 = scmp.ne.s32.totalorder %s176_s30, %s625_s9  ;;  %p633_p5 = scmp.lt.s32.totalorder %s176_s30, %s176_s30 }
  0x16   : > { %p888_p11 = pnand %p554_p10, %p856_p1  ;;  %p634_p7 = scmp.lt.s32.totalorder %s625_s9, %s625_s9 }
  0x18   : > { %p627_p13 = pneg %p888_p11  ;;  %p635_p9 = por %p634_p7, %p633_p5 }
  0x1a   : > { %p628_p0 = pnand %p627_p13, %p626_p12 }
  0x1c   : > { %p629_p3 = pneg %p628_p0 }
  0x1e   : > { %p636_p6 = pnand %p635_p9, %p629_p3 }
  0x20   : > { %639 = shalt.err (!%p636_p6)
}
  0x21   : > { %s791_s10 = smov [#allocation3]   ;;  %s640_s13 = scalar_lea.hbm %s1087_s2, 1024 }
  0x22   : > { %557 = dma.vmem_to_smem (!%p888_p11), %s176_s30, 16, %s791_s10, [#allocation6]  }
  0x23   : > { %p641_p10 = scmp.ne.s32.totalorder %s1087_s2, %s640_s13  ;;  %p647_p6 = scmp.lt.u32.totalorder %s640_s13, %s1087_s2 }
  0x25   : > { %p643_p12 = pnand %p641_p10, %p627_p13 }
  0x27   : > { %p644_p0 = pneg %p643_p12 }
  0x29   : > { %p649_p9 = pnand %p647_p6, %p644_p0 }
  0x2b   : > { %652 = shalt.err (!%p649_p9)
}
  0x2c   : > { %s653_s23 = scalar_lea.vmem %s892_s7, 1024  ;;  %p661_p4 = scmp.lt.s32.totalorder %s892_s7, %s892_s7 }
  0x2d   : > { %p654_p3 = scmp.ne.s32.totalorder %s892_s7, %s653_s23  ;;  %p662_p10 = scmp.lt.s32.totalorder %s653_s23, %s653_s23 }
  0x2f   : > { %p656_p5 = pnand %p654_p3, %p627_p13  ;;  %p663_p12 = por %p662_p10, %p661_p4 }
  0x31   : > { %p657_p7 = pneg %p656_p5 }
  0x33   : > { %p664_p1 = pnand %p663_p12, %p657_p7 }
  0x35   : > { %667 = shalt.err (!%p664_p1)
}
  0x36   : > { %560 = dma.hbm_to_vmem [thread:$0]  (!%p888_p11), %s1087_s2, 1024, %s892_s7, [#allocation4]  }
  0x37   : > { %s32_s30 = sadd.s32 1, %s784_s21  ;;  %s107_s6 = sadd.s32 1, %s776_s19 }
  0x38   : > { %p33_p1 = scmp.ge.s32.totalorder %s32_s30, 2  ;;  %p114_p4 = scmp.ne.s32.totalorder %s776_s19, %s772_s18 }
  0x39   : > { %p115_p13 = scmp.eq.s32.totalorder %s788_s22, 0  ;;  %p571_p0 = scmp.lt.s32.totalorder %s788_s22, 2 }
  0x3a   : > { %s1113_s30 = smov (%p33_p1, %s32_s30), 0  ;;  %p936_p9 = por %p860_p2, %p114_p4 }
  0x3b   : > { %p116_p6 = por %p115_p13, %p114_p4  ;;  %s103_s9 = ssub.s32 %s784_s21, %s1113_s30 }
  0x3c   : > { %s1100_s8 = scalar_select %p936_p9, 1, 0 }
  0x3d   : > { %s197_s10 = sand.u32 1, %s776_s19   ;;  %p105_p3 = scmp.eq.s32.totalorder %s103_s9, 0 }
  0x3e   : > { %s525_s7 = sshll.u32 %s197_s10, 6  ;;  %s540_s11 = sshll.u32 %s784_s21, 10 }
  0x3f   : > { %s945_s12 = scalar_select %p105_p3, %s776_s19, %s107_s6  }
  0x40   : > { %s950_s15 = scalar_lea.hbm %s1088_s3, %s540_s11  ;;  %s201_s25 = scalar_lea.vmem [#allocation8], %s525_s7 }
  0x41   : > { %s211_s16 = sshll.u32 %s201_s25, 4  ;;  %p954_p2 = pnand %p571_p0, %p116_p6  ;;  %s958_s16 = int_to_ptr.vmem [resolvable:$true] %s211_s16 }
  0x42   : > { %s198_s23 = scalar_lea.sflag [#allocation9], %s197_s10  ;;  %s668_s28 = scalar_lea.hbm %s950_s15, 1024 }
  0x43   : > { %p669_p11 = scmp.ne.s32.totalorder %s950_s15, %s668_s28  ;;  %p670_p5 = pneg %p954_p2 }
  0x44   : > { %s673_s9 = scalar_lea.hbm %s1088_s3, 2048  ;;  %p674_p12 = scmp.lt.u32.totalorder %s950_s15, %s1088_s3 }
  0x45   : > { %p671_p7 = pnand %p670_p5, %p669_p11  ;;  %p675_p1 = scmp.lt.u32.totalorder %s673_s9, %s668_s28 }
  0x46   : > { %p677_p13 = scmp.lt.u32.totalorder %s668_s28, %s950_s15 }
  0x47   : > { %p672_p10 = pneg %p671_p7  ;;  %p676_p4 = por %p675_p1, %p674_p12 }
  0x49   : > { %p678_p0 = por %p677_p13, %p676_p4 }
  0x4b   : > { %p679_p6 = pnand %p678_p0, %p672_p10 }
  0x4d   : > { %682 = shalt.err (!%p679_p6)
}
  0x4e   : > { %s683_s10 = scalar_lea.vmem %s958_s16, 1024  ;;  %s792_s13 = smov [#allocation8]  }
  0x4f   : > { %p684_p3 = scmp.ne.s32.totalorder %s958_s16, %s683_s10  ;;  %s688_s14 = sshll.u32 %s792_s13, 4  ;;  %s689_s14 = int_to_ptr.vmem [resolvable:$false] %s688_s14 }
  0x50   : > { %s690_s25 = scalar_lea.vmem %s689_s14, 2048  ;;  %p691_p9 = scmp.lt.s32.totalorder %s958_s16, %s689_s14 }
  0x51   : > { %p686_p11 = pnand %p684_p3, %p670_p5  ;;  %p692_p12 = scmp.lt.s32.totalorder %s690_s25, %s683_s10 }
  0x53   : > { %p687_p7 = pneg %p686_p11  ;;  %p693_p1 = por %p692_p12, %p691_p9 }
  0x55   : > { %p694_p4 = pnand %p693_p1, %p687_p7 }
  0x57   : > { %697 = shalt.err (!%p694_p4)
}
  0x58   : > { %564 = dma.hbm_to_vmem [thread:$0]  (!%p954_p2), %s950_s15, 1024, %s958_s16, %s198_s23  }
  0x59   : > { %220 = sbr.rel (%p879_p8) target bundleno = 154 (0x9a), region = 36  ;;  %p1102_p5 = scmp.ne.s32.totalorder (!%p879_p8), %s1094_s24, 0 }
  0x60   : > { %751 = dma.done.wait (%p1102_p5), [#allocation6], 16  }
  0x61   : > { %753 = vsyncadd (%p1102_p5), [#allocation6], 4294967280 }
  0x62   : > { %755 = dma.done.wait (%p1102_p5), [#allocation4], 1024  }
  0x63   : > { %757 = vsyncadd (%p1102_p5), [#allocation4], 4294966272  ;;  %s996_s0 = sand.u32 1, %s772_s18   ;;  %p1103_p8 = scmp.ne.s32.totalorder %s1096_s26, 0 }
  0x64   : > { %s531_s5 = sshll.u32 %s996_s0, 6  ;;  %s231_s15 = scalar_lea.sflag [#allocation9], %s996_s0 }
  0x65   : > { %s1002_s16 = scalar_lea.vmem [#allocation8], %s531_s5 }
  0x66   : > { %759 = dma.done.wait (%p1103_p8), %s231_s15, 1024  }
  0x67   : > { %761 = vsyncadd (%p1103_p8), %s231_s15, 4294966272 }
  0x68   : > { %239 = sfence }
  0x69   : > { %s533_s24 = sshll.u32 %s780_s20, 10  ;;  %s265_s23 = sld [smem:[#allocation2]]  ;;  %v268_v0 = vld [vmem:[#allocation7] sm:$0xff]  ;;  %v269_v1 = vld [vmem:[#allocation7 + $0x8] sm:$0xff]  ;;  %v270_v3 = vld [vmem:[#allocation7 + $0x10] sm:$0xff] }
  0x6a   : > { %v276_v2 = vstv %s533_s24  ;;  %v271_v4 = vld [vmem:[#allocation7 + $0x18] sm:$0xff]  ;;  %v272_v5 = vld [vmem:[#allocation7 + $0x20] sm:$0xff]  ;;  %v273_v6 = vld [vmem:[#allocation7 + $0x28] sm:$0xff]  ;;  %s350_s29 = sld [smem:[#allocation3]]  ;;  %s534_s6 = sld [smem:[#allocation3 + $0x1]] }
  0x6b   : > { %v274_v7 = vld [vmem:[#allocation7 + $0x30] sm:$0xff]  ;;  %v275_v8 = vld [vmem:[#allocation7 + $0x38] sm:$0xff]  ;;  %v277_v9 = vadd.s32 %v276_v2, %v268_v0  ;;  %v278_v10 = vadd.s32 %v276_v2, %v269_v1  ;;  %v279_v11 = vadd.s32 %v276_v2, %v270_v3  ;;  %v280_v12 = vadd.s32 %v276_v2, %v271_v4  ;;  %s259_s9 = scalar_lea.vmem [#allocation10], %s531_s5  ;;  %s1036_s13 = scalar_lea.hbm %s1089_s4, %s533_s24 }
  0x6c   : > { %v281_v13 = vadd.s32 %v276_v2, %v272_v5  ;;  %v282_v14 = vadd.s32 %v276_v2, %v273_v6  ;;  %v283_v15 = vadd.s32 %v276_v2, %v274_v7  ;;  %v284_v16 = vadd.s32 %v276_v2, %v275_v8  ;;  %s411_s7 = sshll.u32 %s259_s9, 4  ;;  %s395_s14 = scalar_lea.sflag [#allocation5], %s996_s0  ;;  %s1038_s7 = int_to_ptr.vmem [resolvable:$true] %s411_s7 }
  0x6d   : > { %s698_s25 = scalar_lea.vmem %s1038_s7, 1024  ;;  %p1104_p2 = scmp.ne.s32.totalorder %s1100_s8, 0 }
  0x6e   : > { %p699_p9 = scmp.ne.s32.totalorder %s1038_s7, %s698_s25  ;;  %s793_s20 = smov [#allocation10]  }
  0x6f   : > { %s266_s28 = smul.u32 2654435769, %s265_s23  ;;  %s702_s5 = sshll.u32 %s793_s20, 4  ;;  %s703_s5 = int_to_ptr.vmem [resolvable:$false] %s702_s5 }
  0x70   : > { %v351_v44 = vstv %s350_s29  ;;  %v1011_v45 = vstv %s534_s6  ;;  %p700_p10 = pnand %p699_p9, %p1104_p2  ;;  %s704_s15 = scalar_lea.vmem %s703_s5, 2048 }
  0x71   : > { %s267_s26 = sadd.s32 2246822507, %s266_s28  ;;  %p705_p0 = scmp.lt.s32.totalorder %s1038_s7, %s703_s5 }
  0x72   : > { %v285_v17 = vstv %s267_s26  ;;  %p701_p13 = pneg %p700_p10  ;;  %p706_p6 = scmp.lt.s32.totalorder %s704_s15, %s698_s25 }
  0x73   : > { %v286_v18 = vxor.u32 %v285_v17, %v277_v9  ;;  %v287_v19 = vxor.u32 %v285_v17, %v278_v10  ;;  %v288_v20 = vxor.u32 %v285_v17, %v279_v11  ;;  %v289_v21 = vxor.u32 %v285_v17, %v280_v12 }
  0x74   : > { %v290_v22 = vxor.u32 %v285_v17, %v281_v13  ;;  %v291_v23 = vxor.u32 %v285_v17, %v282_v14  ;;  %v292_v24 = vxor.u32 %v285_v17, %v283_v15  ;;  %v293_v25 = vxor.u32 %v285_v17, %v284_v16  ;;  %p707_p3 = por %p706_p6, %p705_p0 }
  0x75   : > { %v294_v26 = vshrl.u32 %v286_v18, 16  ;;  %v295_v27 = vshrl.u32 %v287_v19, 16  ;;  %v296_v28 = vshrl.u32 %v288_v20, 16  ;;  %v297_v29 = vshrl.u32 %v289_v21, 16 }
  0x76   : > { %v298_v30 = vshrl.u32 %v290_v22, 16  ;;  %v299_v31 = vshrl.u32 %v291_v23, 16  ;;  %v300_v32 = vshrl.u32 %v292_v24, 16  ;;  %v301_v33 = vshrl.u32 %v293_v25, 16  ;;  %p708_p11 = pnand %p707_p3, %p701_p13 }
  0x77   : > { %v302_v34 = vxor.u32 %v294_v26, %v286_v18  ;;  %v303_v35 = vxor.u32 %v295_v27, %v287_v19  ;;  %v304_v36 = vxor.u32 %v296_v28, %v288_v20  ;;  %v305_v37 = vxor.u32 %v297_v29, %v289_v21  ;;  %v370_v20 = vld [vmem:[%s1002_s16] sm:$0xff]  ;;  %v371_v21 = vld [vmem:[%s1002_s16 + $0x8] sm:$0xff]  ;;  %v372_v28 = vld [vmem:[%s1002_s16 + $0x10] sm:$0xff] }
  0x78   : > { %v306_v38 = vxor.u32 %v298_v30, %v290_v22  ;;  %v307_v39 = vxor.u32 %v299_v31, %v291_v23  ;;  %v308_v40 = vxor.u32 %v300_v32, %v292_v24  ;;  %v309_v41 = vxor.u32 %v301_v33, %v293_v25  ;;  %v373_v29 = vld [vmem:[%s1002_s16 + $0x18] sm:$0xff] }
  0x79   : > { %v310_v42 = vmul.u32 2146121005, %v302_v34  ;;  %v311_v43 = vmul.u32 2146121005, %v303_v35  ;;  %v374_v34 = vld [vmem:[%s1002_s16 + $0x20] sm:$0xff]  ;;  %v375_v35 = vld [vmem:[%s1002_s16 + $0x28] sm:$0xff] }
  0x7a   : > { %v312_v46 = vmul.u32 2146121005, %v304_v36  ;;  %v313_v47 = vmul.u32 2146121005, %v305_v37 }
  0x7b   : > { %v318_v48 = vshrl.u32 %v310_v42, 16  ;;  %v319_v49 = vshrl.u32 %v311_v43, 16  ;;  %v314_v50 = vmul.u32 2146121005, %v306_v38  ;;  %v315_v51 = vmul.u32 2146121005, %v307_v39 }
  0x7c   : > { %v320_v52 = vshrl.u32 %v312_v46, 16  ;;  %v321_v53 = vshrl.u32 %v313_v47, 16  ;;  %v316_v54 = vmul.u32 2146121005, %v308_v40  ;;  %v317_v55 = vmul.u32 2146121005, %v309_v41 }
  0x7d   : > { %v326_v56 = vxor.u32 %v318_v48, %v310_v42  ;;  %v327_v57 = vxor.u32 %v319_v49, %v311_v43  ;;  %v322_v58 = vshrl.u32 %v314_v50, 16  ;;  %v323_v59 = vshrl.u32 %v315_v51, 16  ;;  %v376_v42 = vld [vmem:[%s1002_s16 + $0x30] sm:$0xff]  ;;  %v377_v43 = vld [vmem:[%s1002_s16 + $0x38] sm:$0xff] }
  0x7e   : > { %v328_v60 = vxor.u32 %v320_v52, %v312_v46  ;;  %v329_v61 = vxor.u32 %v321_v53, %v313_v47  ;;  %v324_v62 = vshrl.u32 %v316_v54, 16  ;;  %v325_v63 = vshrl.u32 %v317_v55, 16 }
  0x7f   : > { %v334_v0 = vshrl.u32 %v326_v56, 8  ;;  %v335_v1 = vshrl.u32 %v327_v57, 8  ;;  %v330_v2 = vxor.u32 %v322_v58, %v314_v50  ;;  %v331_v3 = vxor.u32 %v323_v59, %v315_v51 }
  0x80   : > { %v336_v4 = vshrl.u32 %v328_v60, 8  ;;  %v337_v5 = vshrl.u32 %v329_v61, 8  ;;  %v332_v6 = vxor.u32 %v324_v62, %v316_v54  ;;  %v333_v7 = vxor.u32 %v325_v63, %v317_v55 }
  0x81   : > { %v342_v8 = vcvt.s32.f32 %v334_v0  ;;  %v343_v9 = vcvt.s32.f32 %v335_v1  ;;  %v338_v10 = vshrl.u32 %v330_v2, 8  ;;  %v339_v11 = vshrl.u32 %v331_v3, 8 }
  0x82   : > { %v344_v12 = vcvt.s32.f32 %v336_v4  ;;  %v345_v13 = vcvt.s32.f32 %v337_v5  ;;  %v340_v14 = vshrl.u32 %v332_v6, 8  ;;  %v341_v15 = vshrl.u32 %v333_v7, 8 }
  0x83   : > { %v352_v16 = vmul.f32 %v351_v44, %v342_v8  ;;  %v353_v17 = vmul.f32 %v351_v44, %v343_v9  ;;  %v346_v18 = vcvt.s32.f32 %v338_v10  ;;  %v347_v19 = vcvt.s32.f32 %v339_v11 }
  0x84   : > { %v354_v22 = vmul.f32 %v351_v44, %v344_v12  ;;  %v355_v23 = vmul.f32 %v351_v44, %v345_v13  ;;  %v348_v24 = vcvt.s32.f32 %v340_v14  ;;  %v349_v25 = vcvt.s32.f32 %v341_v15 }
  0x85   : > { %v362_v26 = vadd.f32 %v1011_v45, %v352_v16  ;;  %v363_v27 = vadd.f32 %v1011_v45, %v353_v17  ;;  %v356_v30 = vmul.f32 %v351_v44, %v346_v18  ;;  %v357_v31 = vmul.f32 %v351_v44, %v347_v19 }
  0x86   : > { %v364_v32 = vadd.f32 %v1011_v45, %v354_v22  ;;  %v365_v33 = vadd.f32 %v1011_v45, %v355_v23  ;;  %v358_v36 = vmul.f32 %v351_v44, %v348_v24  ;;  %v359_v37 = vmul.f32 %v351_v44, %v349_v25 }
  0x87   : > { %v378_v38 = vadd.f32 %v370_v20, %v362_v26  ;;  %v379_v39 = vadd.f32 %v371_v21, %v363_v27  ;;  %v366_v40 = vadd.f32 %v1011_v45, %v356_v30  ;;  %v367_v41 = vadd.f32 %v1011_v45, %v357_v31 }
  0x88   : > { %v380_v46 = vadd.f32 %v372_v28, %v364_v32  ;;  %v381_v47 = vadd.f32 %v373_v29, %v365_v33  ;;  %v368_v48 = vadd.f32 %v1011_v45, %v358_v36  ;;  %v369_v49 = vadd.f32 %v1011_v45, %v359_v37 }
  0x89   : > { %386 = vst [vmem:[%s259_s9] sm:$0xff] %v378_v38  ;;  %387 = vst [vmem:[%s259_s9 + $0x8] sm:$0xff] %v379_v39  ;;  %v382_v44 = vadd.f32 %v374_v34, %v366_v40  ;;  %v383_v50 = vadd.f32 %v375_v35, %v367_v41 }
  0x8a   : > { %388 = vst [vmem:[%s259_s9 + $0x10] sm:$0xff] %v380_v46  ;;  %389 = vst [vmem:[%s259_s9 + $0x18] sm:$0xff] %v381_v47  ;;  %v384_v51 = vadd.f32 %v376_v42, %v368_v48  ;;  %v385_v52 = vadd.f32 %v377_v43, %v369_v49 }
  0x8b   : > { %390 = vst [vmem:[%s259_s9 + $0x20] sm:$0xff] %v382_v44  ;;  %391 = vst [vmem:[%s259_s9 + $0x28] sm:$0xff] %v383_v50 }
  0x8c   : > { %392 = vst [vmem:[%s259_s9 + $0x30] sm:$0xff] %v384_v51  ;;  %393 = vst [vmem:[%s259_s9 + $0x38] sm:$0xff] %v385_v52 }
  0x8d   : > { %711 = shalt.err (!%p708_p11)
}
  0x8e   : > { %s712_s0 = scalar_lea.hbm %s1036_s13, 1024  ;;  %s716_s23 = scalar_lea.hbm %s1089_s4, 2048 }
  0x8f   : > { %p713_p7 = scmp.ne.s32.totalorder %s1036_s13, %s712_s0  ;;  %p717_p4 = scmp.lt.u32.totalorder %s1036_s13, %s1089_s4 }
  0x90   : > { %p718_p5 = scmp.lt.u32.totalorder %s716_s23, %s712_s0  ;;  %p720_p9 = scmp.lt.u32.totalorder %s712_s0, %s1036_s13 }
  0x91   : > { %p714_p12 = pnand %p713_p7, %p1104_p2 }
  0x92   : > { %p719_p8 = por %p718_p5, %p717_p4 }
  0x93   : > { %p715_p1 = pneg %p714_p12 }
  0x94   : > { %p721_p10 = por %p720_p9, %p719_p8 }
  0x96   : > { %p722_p13 = pnand %p721_p10, %p715_p1 }
  0x98   : > { %725 = shalt.err (!%p722_p13)
}
  0x99   : > { %552 = dma.vmem_to_hbm [thread:$0]  (%p1104_p2), %s1038_s7, 1024, %s1036_s13, %s395_s14  }
  0x9a PF: > { %s423_s29 = sand.u32 1, %s768_s17   ;;  %p1105_p0 = scmp.ne.s32.totalorder %s1097_s27, 0 }
  0x9b   : > { %p1106_p6 = scmp.ge.s32.totalorder %s788_s22, 2  ;;  %s424_s6 = scalar_lea.sflag [#allocation5], %s423_s29 }
  0x9d   : > { %p566_p3 = pnand %p1106_p6, %p1105_p0 }
  0x9f   : > { %763 = dma.done.wait (!%p566_p3), %s424_s6, 1024  }
  0xa0   : > { %765 = vsyncadd (!%p566_p3), %s424_s6, 4294966272  ;;  %s23_s22 = sadd.s32 1, %s788_s22   ;;  %s1107_s17 = smov %s772_s18 }
  0xa1   : > { %p20_p11 = scmp.ge.s32.totalorder %s23_s22, 4   ;;  %s1108_s18 = smov %s776_s19 }
  0xa2   : > { %s1109_s19 = smov %s945_s12  ;;  %s1110_s20 = smov %s784_s21 }
  0xa3   : > { %s1111_s21 = smov %s1113_s30  ;;  %22 = sbr.rel (!%p20_p11) target bundleno = 10 (0xa), region = 91 }
  0xaa   :  { %429 = vsyncpa [#allocation4], 1 }
  0xab   :  { %431 = vsyncpa [#allocation4 + $0x1], 1 }
  0xac   :  { %432 = vsyncpa [#allocation9], 1 }
  0xad   :  { %434 = vsyncpa [#allocation9 + $0x1], 1 }
  0xae   :  { %435 = vsyncpa [#allocation5], 1 }
  0xaf   :  { %437 = vsyncpa [#allocation5 + $0x1], 1 }
  0xb0   :  { %438 = vsyncpa [#allocation6], 1 }
  0xb1   :  { %440 = vsyncpa [#allocation6 + $0x1], 1 }

</bundles_post_ra>
